<compile_context>
chip_gen: v6e
topology: v6e:2x2x1
jax: 0.10.0
libtpu: 0.0.40
codegen_flags: <defaults>
</compile_context>

<pallas_src>
import functools

import jax
import jax.numpy as jnp
from jax.experimental import pallas as pl
from jax.experimental.pallas import tpu as pltpu


# ---------------------------------------------------------------------------
# Kernel body: per-row instance norm + affine, rows independent.
# ---------------------------------------------------------------------------
def _adain_norm_kernel(f_ref, mv_ref, o_ref, *, eps, hw):
    # f_ref: (R, HW) feature rows; mv_ref: (R, 2) = [affine_mean, affine_var].
    f = f_ref[...].astype(jnp.float32)

    inv_n = 1.0 / hw
    # torch.var is unbiased (ddof=1); HW == 1 is degenerate (nan) like torch.
    inv_nm1 = (1.0 / (hw - 1)) if hw > 1 else float("nan")

    f_mean = jnp.sum(f, axis=-1, keepdims=True) * inv_n                 # (R, 1)
    diff = f - f_mean
    f_var = jnp.sum(diff * diff, axis=-1, keepdims=True) * inv_nm1 + eps
    inv_std = jax.lax.rsqrt(f_var)                                      # (R, 1)

    mv = mv_ref[...].astype(jnp.float32)
    scale = inv_std * mv[:, 1:2]            # affine "var" head
    shift = mv[:, 0:1] - f_mean * scale     # affine "mean" head, de-mean folded in
    o_ref[...] = (f * scale + shift).astype(o_ref.dtype)


# ---------------------------------------------------------------------------
# Generation-aware sizing helpers.
# ---------------------------------------------------------------------------
def _vmem_capacity_bytes():
    try:
        return int(pltpu.get_tpu_info().vmem_capacity_bytes)
    except Exception:
        return 64 * 1024 * 1024          # conservative (v7x per-TC minimum)


def _tpu_num_tensorcores():
    try:
        kind = jax.devices()[0].device_kind.lower()
    except Exception:
        return 1
    # v7x (and v4 megacore) expose 2 TensorCores per device; v5e/v6e have 1.
    return 2 if ("v7" in kind or "v4" in kind) else 1


def _pick_block_rows(bc, row_bytes, target_block_bytes, num_cores):
    """Rows per grid step: a multiple of 8 sublanes, or the full row axis."""
    max_rows = max(8, (target_block_bytes // max(row_bytes, 1)) // 8 * 8)

    # Single-TC chips: the grid is a serial loop; no reason to force >1 step.
    if bc <= max_rows and num_cores == 1:
        return bc                       # full-dim block (exempt from 8-rule)

    steps = max(1, pl.cdiv(bc, max_rows))
    if num_cores > 1:
        # Round the step count up to a multiple of the core count so the
        # 'parallel' grid splits evenly across TensorCores.
        steps = max(steps, num_cores)
        steps = pl.cdiv(steps, num_cores) * num_cores

    block_rows = min(bc, pl.cdiv(bc, steps) * 1)
    block_rows = min(bc, (block_rows + 7) // 8 * 8)
    if block_rows == bc:
        return bc
    return max(8, block_rows)


# ---------------------------------------------------------------------------
# Forward wrapper.
# ---------------------------------------------------------------------------
def adain_forward(feature_map, para_code, params, eps=1e-5,
                  target_block_bytes=None):
    """feature_map: (B, C, H, W), para_code: (B, P)."""
    B, C, H, W = feature_map.shape
    HW = H * W
    BC = B * C

    # ---- Parameter MLP in the wrapper (one batched matmul per layer). ----
    h = jnp.maximum(para_code @ params["w1"] + params["b1"], 0.0)       # (B, P)
    mean_vec = (h @ params["wm"] + params["bm"]).reshape(BC)            # (BC,)
    var_vec = (h @ params["wv"] + params["bv"]).reshape(BC)             # (BC,)
    mv = jnp.stack([mean_vec, var_vec], axis=-1).astype(jnp.float32)    # (BC, 2)

    # ---- Row view of the feature map; HW stays unpadded (full-dim block). ----
    f2 = feature_map.reshape(BC, HW)
    itemsize = jnp.dtype(feature_map.dtype).itemsize
    row_bytes = HW * itemsize

    vmem_cap = _vmem_capacity_bytes()
    num_cores = _tpu_num_tensorcores()
    if target_block_bytes is None:
        # v7x (64 MiB VMEM, 3.2 TB/s HBM): bigger blocks amortize per-step
        # overhead; v5e/v6e are already ~roofline at 2 MiB.
        target_block_bytes = (4 * 1024 * 1024 if vmem_cap <= 64 * 1024 * 1024
                              else 2 * 1024 * 1024)

    block_rows = _pick_block_rows(BC, row_bytes, target_block_bytes, num_cores)
    grid = (pl.cdiv(BC, block_rows),)     # ragged last block handled by Pallas

    # ---- VMEM budget from actual usage: 2x double-buffered in + out blocks
    #      plus ~3 f32 temporaries of one block, with slack; capped below the
    #      physical per-core VMEM of this chip. ----
    block_io_bytes = block_rows * HW * itemsize
    block_f32_bytes = block_rows * HW * 4
    vmem_needed = 4 * block_io_bytes + 3 * block_f32_bytes + (4 << 20)
    vmem_limit = int(min(max(vmem_needed, 32 << 20), vmem_cap - (12 << 20)))
    # TODO(synk): for extremely large HW (single row block > ~8 MiB) the HW
    # axis itself should be tiled with an accumulating reduction.

    kernel = functools.partial(_adain_norm_kernel, eps=eps, hw=HW)

    out = pl.pallas_call(
        kernel,
        out_shape=jax.ShapeDtypeStruct((BC, HW), feature_map.dtype),
        grid_spec=pltpu.PrefetchScalarGridSpec(
            num_scalar_prefetch=0,
            grid=grid,
            in_specs=[
                pl.BlockSpec((block_rows, HW), lambda i: (i, 0)),  # feature rows
                pl.BlockSpec((block_rows, 2), lambda i: (i, 0)),   # [mean, var]
            ],
            out_specs=pl.BlockSpec((block_rows, HW), lambda i: (i, 0)),
        ),
        compiler_params=pltpu.CompilerParams(
            dimension_semantics=("parallel",),
            vmem_limit_bytes=vmem_limit,
        ),
    )(f2, mv)

    return out.reshape(B, C, H, W)


# ---------------------------------------------------------------------------
# Pure-JAX reference mirroring the PyTorch forward.
# ---------------------------------------------------------------------------
def adain_reference(feature_map, para_code, params, eps=1e-5):
    B, C, H, W = feature_map.shape
    h = jnp.maximum(para_code @ params["w1"] + params["b1"], 0.0)
    mean = (h @ params["wm"] + params["bm"])[:, :, None, None]
    var = (h @ params["wv"] + params["bv"])[:, :, None, None]
    flat = feature_map.reshape(B, C, -1)
    f_mean = jnp.mean(flat, axis=2)[:, :, None, None]
    f_var = jnp.var(flat, axis=2, ddof=1)[:, :, None, None] + eps  # torch.var: unbiased
    f_std = jnp.sqrt(f_var)
    norm = (feature_map - f_mean) / f_std
    return norm * var + mean


def init_params(key, para_ch, feature_ch):
    k1, k2, k3, k4, k5, k6 = jax.random.split(key, 6)
    s1 = 1.0 / jnp.sqrt(para_ch)
    return {
        # stored so forward is x @ W + b (i.e. W = torch_weight.T)
        "w1": jax.random.uniform(k1, (para_ch, para_ch), jnp.float32, -s1, s1),
        "b1": jax.random.uniform(k2, (para_ch,), jnp.float32, -s1, s1),
        "wm": jax.random.uniform(k3, (para_ch, feature_ch), jnp.float32, -s1, s1),
        "bm": jax.random.uniform(k4, (feature_ch,), jnp.float32, -s1, s1),
        "wv": jax.random.uniform(k5, (para_ch, feature_ch), jnp.float32, -s1, s1),
        "bv": jax.random.uniform(k6, (feature_ch,), jnp.float32, -s1, s1),
    }


if __name__ == "__main__":
    B, C, H, W = 2, 8, 16, 16   # feature_ch = C = 8
    P = 8                       # para_ch = 8

    key = jax.random.PRNGKey(0)
    kf, kp, kw = jax.random.split(key, 3)
    feature_map = jax.random.normal(kf, (B, C, H, W), jnp.float32)
    para_code = jax.random.normal(kp, (B, P), jnp.float32)
    params = init_params(kw, P, C)

    out = adain_forward(feature_map, para_code, params)
    out = jax.block_until_ready(out)

    ref = adain_reference(feature_map, para_code, params)
    assert out.shape == (B, C, H, W)
    assert jnp.allclose(out, ref, atol=1e-4, rtol=1e-4), float(jnp.max(jnp.abs(out - ref)))
    print("KERNEL_OK")
</pallas_src>

<mosaic_0001>
module attributes {stable_mosaic.version = 11 : i64} {
  func.func @_adain_norm_kernel(%arg0: i32, %arg1: memref<16x256xf32, #tpu.memory_space<vmem>>, %arg2: memref<16x2xf32, #tpu.memory_space<vmem>>, %arg3: memref<16x256xf32, #tpu.memory_space<vmem>>) attributes {dimension_semantics = [#tpu.dimension_semantics<parallel>], iteration_bounds = array<i64: 1>, scalar_prefetch = 0 : i64, scratch_operands = 0 : i64, tpu.core_type = #tpu.core_type<tc>, window_params = [{transform_indices = @transform_0, window_bounds = array<i64: 16, 256>}, {transform_indices = @transform_1, window_bounds = array<i64: 16, 2>}, {transform_indices = @transform_2, window_bounds = array<i64: 16, 256>}]} {
    %c0 = arith.constant 0 : index
    %c0_0 = arith.constant 0 : index
    %0 = vector.load %arg1[%c0, %c0_0] : memref<16x256xf32, #tpu.memory_space<vmem>>, vector<16x256xf32>
    %cst = arith.constant dense<0.000000e+00> : vector<16xf32>
    %1 = vector.multi_reduction <add>, %0, %cst [1] : vector<16x256xf32> to vector<16xf32>
    %2 = vector.shape_cast %1 : vector<16xf32> to vector<16x1xf32>
    %cst_1 = arith.constant 3.906250e-03 : f32
    %3 = vector.broadcast %cst_1 : f32 to vector<16x1xf32>
    %4 = arith.mulf %2, %3 : vector<16x1xf32>
    %5 = vector.broadcast %4 : vector<16x1xf32> to vector<16x256xf32>
    %6 = arith.subf %0, %5 : vector<16x256xf32>
    %7 = arith.mulf %6, %6 : vector<16x256xf32>
    %cst_2 = arith.constant dense<0.000000e+00> : vector<16xf32>
    %8 = vector.multi_reduction <add>, %7, %cst_2 [1] : vector<16x256xf32> to vector<16xf32>
    %9 = vector.shape_cast %8 : vector<16xf32> to vector<16x1xf32>
    %cst_3 = arith.constant 0.00392156886 : f32
    %10 = vector.broadcast %cst_3 : f32 to vector<16x1xf32>
    %11 = arith.mulf %9, %10 : vector<16x1xf32>
    %cst_4 = arith.constant 9.99999974E-6 : f32
    %12 = vector.broadcast %cst_4 : f32 to vector<16x1xf32>
    %13 = arith.addf %11, %12 : vector<16x1xf32>
    %14 = math.rsqrt %13 : vector<16x1xf32>
    %c0_5 = arith.constant 0 : index
    %c0_6 = arith.constant 0 : index
    %15 = vector.load %arg2[%c0_5, %c0_6] : memref<16x2xf32, #tpu.memory_space<vmem>>, vector<16x2xf32>
    %16 = vector.extract_strided_slice %15 {offsets = [0, 1], sizes = [16, 1], strides = [1, 1]} : vector<16x2xf32> to vector<16x1xf32>
    %17 = arith.mulf %14, %16 : vector<16x1xf32>
    %18 = vector.extract_strided_slice %15 {offsets = [0, 0], sizes = [16, 1], strides = [1, 1]} : vector<16x2xf32> to vector<16x1xf32>
    %19 = arith.mulf %4, %17 : vector<16x1xf32>
    %20 = arith.subf %18, %19 : vector<16x1xf32>
    %21 = vector.broadcast %17 : vector<16x1xf32> to vector<16x256xf32>
    %22 = arith.mulf %0, %21 : vector<16x256xf32>
    %23 = vector.broadcast %20 : vector<16x1xf32> to vector<16x256xf32>
    %24 = arith.addf %22, %23 : vector<16x256xf32>
    %c0_7 = arith.constant 0 : index
    %c0_8 = arith.constant 0 : index
    %25 = vector.load %arg3[%c0_7, %c0_8] : memref<16x256xf32, #tpu.memory_space<vmem>>, vector<16x256xf32>
    tpu.vector_store %arg3[%c0_7, %c0_8], %24 {strides = array<i32>} : memref<16x256xf32, #tpu.memory_space<vmem>>, vector<16x256xf32>,
    return
  }
  func.func @transform_0(%arg0: i32) -> (i32, i32) {
    %c0_i32 = arith.constant 0 : i32
    %c0_i32_0 = arith.constant 0 : i32
    return %arg0, %c0_i32 : i32, i32
  }
  func.func @transform_1(%arg0: i32) -> (i32, i32) {
    %c0_i32 = arith.constant 0 : i32
    %c0_i32_0 = arith.constant 0 : i32
    return %arg0, %c0_i32 : i32, i32
  }
  func.func @transform_2(%arg0: i32) -> (i32, i32) {
    %c0_i32 = arith.constant 0 : i32
    %c0_i32_0 = arith.constant 0 : i32
    return %arg0, %c0_i32 : i32, i32
  }
}

</mosaic_0001>

<bundles_post_ra>
// kernel: tpu_custom_call.1
= control target key start
LH: loop header
LB: loop body
LE: loop exit
PB: predicated region body
PF: predicated region fallthrough
CT: control target
= control target key end

     0   :  { %7 = vsyncpa [#allocation3], 0  ;;  %s226_s0 = inlined_call_operand.hbm [shape: f32[16,256], index: 0, kind: input, shape index: {}]   ;;  %s227_s1 = inlined_call_operand.vmem [shape: f32[16,2], index: 1, kind: input, shape index: {}]   ;;  %s228_s2 = inlined_call_operand.hbm [shape: f32[16,256], index: 2, kind: output, shape index: {}]  }
   0x1   :  { %8 = vsyncpa [#allocation4], 0  ;;  %s181_s9 = smov [#allocation2]  }
   0x2   :  { %s14_s10 = sshll.u32 %s181_s9, 4  ;;  %s15_s10 = int_to_ptr.vmem [resolvable:$true] %s14_s10 }
   0x3   :  { %s145_s11 = scalar_lea.vmem %s15_s10, 512  ;;  %p150_p1 = scmp.lt.s32.totalorder %s15_s10, %s15_s10 }
   0x4   :  { %p146_p0 = scmp.ne.s32.totalorder %s15_s10, %s145_s11  ;;  %p151_p2 = scmp.lt.s32.totalorder %s145_s11, %s145_s11 }
   0x6   :  { %p152_p3 = por %p151_p2, %p150_p1 }
   0x8   :  { %p153_p4 = pnand %p152_p3, %p146_p0 }
   0xa   :  { %156 = shalt.err (!%p153_p4)
}
   0xb   :  { %s182_s12 = smov 256   ;;  %s183_s13 = smov 16  }
   0xc   :  { %20 = dma.hbm_to_vmem [thread:$0]  %s226_s0, 512, %s15_s10, [#allocation3], %s182_s12, %s182_s12, %s183_s13  }
   0xd   :  { %177 = dma.done.wait [#allocation3], 512  }
   0xe   :  { %178 = vsyncadd [#allocation3], 4294966784  ;;  %v26_v0 = vld [vmem:[#allocation2] sm:$0xff]  ;;  %v27_v1 = vld [vmem:[#allocation2 + $0x8] sm:$0xff]  ;;  %v184_v20 = vmov 1   ;;  %v185_v27 = vmov 0  }
   0xf   :  { %v209_v2 = vld [vmem:[#allocation2 + $0x10] sm:$0xff]  ;;  %v30_v3 = vadd.f32 %v27_v1, %v26_v0  ;;  %v29_v4 = vld [vmem:[#allocation2 + $0x18] sm:$0xff]  ;;  %130 = vset.pattern.permute.xlu1 %v184_v20  ;;  %131 = vset.pattern.permute.xlu0 %v185_v27  ;;  %v58_v28 = vld [vmem:[%s227_s1] sm:$0xff]  ;;  %s186_s19 = smov 127  }
  0x10   :  { %v33_v5 = vadd.f32 %v29_v4, %v209_v2  ;;  %v59_v31 = vld [vmem:[%s227_s1 + $0x8] sm:$0xff]  ;;  %s187_s1 = smov [#allocation5]  }
  0x11   :  { %31 = vadd.xlane.f32.xlu0 %v30_v3  ;;  %s111_s20 = sshll.u32 %s187_s1, 4  ;;  %s112_s20 = int_to_ptr.vmem [resolvable:$true] %s111_s20 }
  0x12   :  { %s157_s21 = scalar_lea.vmem %s112_s20, 512  ;;  %p162_p6 = scmp.lt.s32.totalorder %s112_s20, %s112_s20 }
  0x13   :  { %p158_p5 = scmp.ne.s32.totalorder %s112_s20, %s157_s21  ;;  %p163_p7 = scmp.lt.s32.totalorder %s157_s21, %s157_s21 }
  0x15   :  { %34 = vadd.xlane.f32.xlu0 %v33_v5  ;;  %p164_p8 = por %p163_p7, %p162_p6 }
  0x17   :  { %p165_p9 = pnand %p164_p8, %p158_p5 }
  0x9a   :  { %v32_v6 = vpop.xlane.xlu0 %31 }
  0x9b   :  { %v36_v7 = vmul.f32 0.00390625, %v32_v6 }
  0x9d   :  { %v38_v8 = vsub.f32 %v26_v0, %v36_v7  ;;  %v39_v9 = vsub.f32 %v27_v1, %v36_v7 }
  0x9e   :  { %v35_v10 = vpop.xlane.xlu0 %34 }
  0x9f   :  { %v37_v11 = vmul.f32 0.00390625, %v35_v10  ;;  %v42_v12 = vmul.f32 %v38_v8, %v38_v8  ;;  %v43_v13 = vmul.f32 %v39_v9, %v39_v9 }
  0xa1   :  { %v46_v14 = vadd.f32 %v43_v13, %v42_v12  ;;  %v40_v15 = vsub.f32 %v209_v2, %v37_v11  ;;  %v41_v16 = vsub.f32 %v29_v4, %v37_v11 }
  0xa3   :  { %47 = vadd.xlane.f32.xlu1 %v46_v14  ;;  %v44_v17 = vmul.f32 %v40_v15, %v40_v15  ;;  %v45_v18 = vmul.f32 %v41_v16, %v41_v16 }
  0xa5   :  { %v49_v19 = vadd.f32 %v45_v18, %v44_v17 }
  0xa7   :  { %50 = vadd.xlane.f32.xlu1 %v49_v19 }
 0x12c   :  { %v48_v21 = vpop.xlane.xlu1 %47 }
 0x12d   :  { %v52_v22 = vmul.f32 0.003921569, %v48_v21 }
 0x12f   :  { %v54_v23 = vadd.f32 1e-05, %v52_v22 }
 0x130   :  { %v51_v24 = vpop.xlane.xlu1 %50 }
 0x131   :  { %133 = vrsqrt.f32 %v54_v23  ;;  %v53_v25 = vmul.f32 0.003921569, %v51_v24 }
 0x133   :  { %v55_v26 = vadd.f32 1e-05, %v53_v25 }
 0x135   :  { %135 = vrsqrt.f32 %v55_v26 }
 0x13e   :  { %v134_v29 = vpop.eup %133 }
 0x13f   :  { %v60_v30 = vmul.f32 %v134_v29, %v58_v28 }
 0x141   :  { %v62_v32 = vmul.f32 %v60_v30, %v36_v7 }
 0x142   :  { %v136_v33 = vpop.eup %135 }
 0x143   :  { %66 = vrot.lane.b32.xlu0 %v62_v32, %s186_s19  ;;  %v61_v34 = vmul.f32 %v136_v33, %v59_v31 }
 0x145   :  { %v63_v35 = vmul.f32 %v61_v34, %v37_v11 }
 0x147   :  { %68 = vrot.lane.b32.xlu1 %v63_v35, %s186_s19 }
 0x14b   :  { %76 = vperm.xlu1 %130, %v60_v30  }
 0x14f   :  { %81 = vperm.xlu1 %130, %v61_v34  }
 0x153   :  { %132 = vset.pattern.permute.xlu1 %v185_v27 }
 0x1b5   :  { %v67_v36 = vpop.permute.xlu0 %66 }
 0x1b6   :  { %v72_v37 = vsub.f32 %v58_v28, %v67_v36 }
 0x1b8   :  { %90 = vperm.xlu0 %131, %v72_v37  }
 0x1b9   :  { %v69_v38 = vpop.permute.xlu1 %68 }
 0x1ba   :  { %v73_v39 = vsub.f32 %v59_v31, %v69_v38 }
 0x1bc   :  { %95 = vperm.xlu1 %132, %v73_v39  }
 0x1c6   :  { %v77_v40 = vpop.permute.xlu1 %76 }
 0x1c7   :  { %v84_v41 = vmul.f32 %v77_v40, %v26_v0  ;;  %v85_v42 = vmul.f32 %v77_v40, %v27_v1 }
 0x1ca   :  { %v82_v43 = vpop.permute.xlu1 %81 }
 0x1cb   :  { %v86_v47 = vmul.f32 %v82_v43, %v209_v2  ;;  %v87_v48 = vmul.f32 %v82_v43, %v29_v4 }
 0x233   :  { %v91_v44 = vpop.permute.xlu0 %90 }
 0x234   :  { %v98_v45 = vadd.f32 %v91_v44, %v84_v41  ;;  %v99_v46 = vadd.f32 %v91_v44, %v85_v42 }
 0x236   :  { %102 = vst [vmem:[#allocation5] sm:$0xff] %v98_v45  ;;  %103 = vst [vmem:[#allocation5 + $0x8] sm:$0xff] %v99_v46 }
 0x237   :  { %v96_v49 = vpop.permute.xlu1 %95 }
 0x238   :  { %v100_v50 = vadd.f32 %v96_v49, %v86_v47  ;;  %v101_v51 = vadd.f32 %v96_v49, %v87_v48 }
 0x23a   :  { %104 = vst [vmem:[#allocation5 + $0x10] sm:$0xff] %v100_v50  ;;  %105 = vst [vmem:[#allocation5 + $0x18] sm:$0xff] %v101_v51 }
 0x23b   :  { %168 = shalt.err (!%p165_p9)
}
 0x23c   :  { %117 = dma.vmem_to_hbm [thread:$0]  %s112_s20, 512, %s228_s2, [#allocation4], %s182_s12, %s182_s12, %s183_s13  }
 0x23d   :  { %179 = dma.done.wait [#allocation4], 512  }
 0x23e   :  { %180 = vsyncadd [#allocation4], 4294966784 }
 0x23f   :  { %121 = vsyncpa [#allocation3], 1 }
 0x240   :  { %122 = vsyncpa [#allocation4], 1 }

</bundles_post_ra>
